<compile_context>
chip_gen: v7x
topology: tpu7x:2x2x1
jax: 0.10.0
libtpu: 0.0.40
codegen_flags: <defaults>
</compile_context>

<pallas_src>
import jax
import jax.numpy as jnp
from jax.experimental import pallas as pl
from jax.experimental.pallas import tpu as pltpu

_MIB = 1024 * 1024


def _vmem_budget():
    """Generation-aware (max_tile_bytes, vmem_limit_bytes)."""
    try:
        info = pltpu.get_tpu_info()
        cap = int(getattr(info, "vmem_capacity_bytes", 64 * _MIB))
    except Exception:
        cap = 64 * _MIB  # conservative fallback
    if cap >= 100 * _MIB:           # v5e / v6e: 128 MiB physical VMEM
        return 12 * _MIB, 64 * _MIB
    return 4 * _MIB, 36 * _MIB      # v7x: 64 MiB physical VMEM per TensorCore


def _pick_tile_rows(n, c, itemsize, max_tile_bytes, max_rows=2048, min_grid_steps=4):
    """Batch-tile row count: multiple of the sublane quantum, <= max_tile_bytes, and
    small enough that the grid has >= min_grid_steps steps (pipelining + v7x dual-TC)."""
    row_mult = 8 if itemsize >= 4 else 16          # f32 -> 8, bf16 -> 16
    rows = (max_tile_bytes // max(1, c * itemsize)) // row_mult * row_mult
    rows = max(row_mult, min(rows, max_rows))
    n_ceil = -(-n // row_mult) * row_mult
    cap = max(row_mult, (n_ceil // min_grid_steps) // row_mult * row_mult)
    rows = min(rows, cap, n_ceil)
    return rows, row_mult


def _make_ce_kernel(n_valid, tn, c, chunk):
    """Per-sample cross entropy for one batch tile, online LSE over class chunks.

    logits_ref: (tn, C) input dtype (f32/bf16), upcast per-chunk
    target_ref: (tn, 1) int32 class indices
    loss_ref  : (tn, 1) float32 per-sample CE (0 for rows past the true batch)
    """
    def kernel(logits_ref, target_ref, loss_ref):
        tgt = target_ref[...]                                   # (tn, 1)
        m = jnp.full((tn, 1), -jnp.inf, dtype=jnp.float32)      # running max
        s = jnp.zeros((tn, 1), dtype=jnp.float32)               # running sum exp(x - m)
        t = jnp.zeros((tn, 1), dtype=jnp.float32)               # target logit
        for start in range(0, c, chunk):                        # static, unrolled
            size = min(chunk, c - start)
            x = logits_ref[:, start:start + size].astype(jnp.float32)   # (tn, size)
            cm = jnp.max(x, axis=-1, keepdims=True)
            m_new = jnp.maximum(m, cm)
            s = s * jnp.exp(m - m_new) + jnp.sum(jnp.exp(x - m_new), axis=-1, keepdims=True)
            cls = jax.lax.broadcasted_iota(jnp.int32, x.shape, 1) + jnp.int32(start)
            t = t + jnp.sum(jnp.where(cls == tgt, x, jnp.float32(0.0)),
                            axis=-1, keepdims=True)
            m = m_new
        loss = (m + jnp.log(s)) - t                              # (tn, 1)
        # Mask rows past the true batch (ragged tail block); their writes are also
        # discarded by the output boundary, but keep them finite/zero defensively.
        row = pl.program_id(0) * tn + jax.lax.broadcasted_iota(jnp.int32, (tn, 1), 0)
        loss_ref[...] = jnp.where(row < n_valid, loss, jnp.float32(0.0))
    return kernel


def spl_loss_forward(logits, target, index, v, threshold=1e-9, tile_rows=None):
    """Functional SPLLoss.forward. Returns (loss_scalar, new_v, per_sample_ce).

    logits : (N, C) float32 or bfloat16
    target : (N,)   int class indices
    index  : (N,)   int positions into v
    v      : (n_samples,) float32 persistent selection buffer
    """
    N, C = logits.shape
    itemsize = jnp.dtype(logits.dtype).itemsize
    max_tile_bytes, vmem_limit = _vmem_budget()

    if tile_rows is None:
        tn, _ = _pick_tile_rows(N, C, itemsize, max_tile_bytes)
    else:
        tn = tile_rows
        row_mult = 8 if itemsize >= 4 else 16
        assert tn % row_mult == 0, "tile_rows must be a multiple of the sublane quantum"

    chunk = C if C <= 1024 else 1024
    tgt2d = target.astype(jnp.int32).reshape(N, 1)

    cost = pl.CostEstimate(
        flops=5 * N * C,
        transcendentals=N * C,
        bytes_accessed=N * C * itemsize + 8 * N,
    )

    per_sample = pl.pallas_call(
        _make_ce_kernel(N, tn, C, chunk),
        out_shape=jax.ShapeDtypeStruct((N, 1), jnp.float32),
        grid=(pl.cdiv(N, tn),),
        in_specs=[
            pl.BlockSpec((tn, C), lambda i: (i, 0)),
            pl.BlockSpec((tn, 1), lambda i: (i, 0)),
        ],
        out_specs=pl.BlockSpec((tn, 1), lambda i: (i, 0)),
        compiler_params=pltpu.CompilerParams(
            dimension_semantics=("parallel",),     # no accumulator -> shards across TCs
            vmem_limit_bytes=vmem_limit,
        ),
        cost_estimate=cost,
    )(logits, tgt2d)

    per_sample = per_sample[:, 0]                               # (N,)
    super_loss = jnp.sum(per_sample) / N                        # reduction='mean' (scalar)
    temp_v = super_loss < threshold                             # scalar bool
    new_v = v.at[index].set(temp_v.astype(v.dtype))             # self.v[i] = temp_v for i in index
    out = super_loss * temp_v.astype(jnp.float32)               # mean(scalar * scalar) == scalar
    return out, new_v, per_sample


if __name__ == "__main__":
    key = jax.random.PRNGKey(0)
    k1, k2, k3 = jax.random.split(key, 3)

    # N deliberately not a multiple of the tile so the un-padded ragged-tail path is
    # exercised; the picker yields tn=8 -> a 4-step pipelined grid.
    N, C, n_samples = 30, 128, 64
    logits = jax.random.normal(k1, (N, C), dtype=jnp.float32)
    target = jax.random.randint(k2, (N,), 0, C, dtype=jnp.int32)
    index = jax.random.permutation(k3, n_samples)[:N].astype(jnp.int32)
    v = jnp.zeros((n_samples,), dtype=jnp.float32)

    fwd = jax.jit(spl_loss_forward, static_argnames=("threshold", "tile_rows"))
    loss, new_v, per_sample = fwd(logits, target, index, v)
    jax.block_until_ready((loss, new_v, per_sample))

    # Sanity check against a plain-JAX reference (not part of the output contract).
    ref_ce = -(jax.nn.log_softmax(logits, axis=-1)[jnp.arange(N), target])
    ref_mean = jnp.mean(ref_ce)
    assert jnp.allclose(per_sample, ref_ce, atol=1e-5, rtol=1e-5)
    ref_temp_v = (ref_mean < 1e-9).astype(jnp.float32)
    assert jnp.allclose(loss, ref_mean * ref_temp_v, atol=1e-6)
    ref_v = jnp.zeros((n_samples,), jnp.float32).at[index].set(ref_temp_v)
    assert jnp.allclose(new_v, ref_v)

    print("KERNEL_OK")
</pallas_src>

<mosaic_0001>
module attributes {stable_mosaic.version = 11 : i64} {
  func.func @kernel(%arg0: i32, %arg1: memref<8x128xf32, #tpu.memory_space<vmem>>, %arg2: memref<8x1xi32, #tpu.memory_space<vmem>>, %arg3: memref<8x1xf32, #tpu.memory_space<vmem>>) attributes {dimension_semantics = [#tpu.dimension_semantics<parallel>], iteration_bounds = array<i64: 4>, scalar_prefetch = 0 : i64, scratch_operands = 0 : i64, tpu.core_type = #tpu.core_type<tc>, window_params = [{transform_indices = @transform_0, window_bounds = array<i64: 8, 128>}, {transform_indices = @transform_1, window_bounds = array<i64: 8, 1>}, {transform_indices = @transform_2, window_bounds = array<i64: 8, 1>}]} {
    %c0 = arith.constant 0 : index
    %c0_0 = arith.constant 0 : index
    %0 = vector.load %arg2[%c0, %c0_0] : memref<8x1xi32, #tpu.memory_space<vmem>>, vector<8x1xi32>
    %cst = arith.constant 0xFF800000 : f32
    %1 = vector.broadcast %cst : f32 to vector<8x1xf32>
    %cst_1 = arith.constant 0.000000e+00 : f32
    %2 = vector.broadcast %cst_1 : f32 to vector<8x1xf32>
    %cst_2 = arith.constant 0.000000e+00 : f32
    %3 = vector.broadcast %cst_2 : f32 to vector<8x1xf32>
    %c0_3 = arith.constant 0 : index
    %c0_4 = arith.constant 0 : index
    %4 = vector.load %arg1[%c0_3, %c0_4] : memref<8x128xf32, #tpu.memory_space<vmem>>, vector<8x128xf32>
    %cst_5 = arith.constant dense<0xFF800000> : vector<8xf32>
    %5 = vector.multi_reduction <maximumf>, %4, %cst_5 [1] : vector<8x128xf32> to vector<8xf32>
    %6 = vector.shape_cast %5 : vector<8xf32> to vector<8x1xf32>
    %7 = arith.maximumf %1, %6 : vector<8x1xf32>
    %8 = arith.subf %1, %7 : vector<8x1xf32>
    %9 = math.exp %8 : vector<8x1xf32>
    %10 = arith.mulf %2, %9 : vector<8x1xf32>
    %11 = vector.broadcast %7 : vector<8x1xf32> to vector<8x128xf32>
    %12 = arith.subf %4, %11 : vector<8x128xf32>
    %13 = math.exp %12 : vector<8x128xf32>
    %cst_6 = arith.constant dense<0.000000e+00> : vector<8xf32>
    %14 = vector.multi_reduction <add>, %13, %cst_6 [1] : vector<8x128xf32> to vector<8xf32>
    %15 = vector.shape_cast %14 : vector<8xf32> to vector<8x1xf32>
    %16 = arith.addf %10, %15 : vector<8x1xf32>
    %17 = tpu.iota {dimensions = array<i32: 1>} : vector<8x128xi32>
    %c0_i32 = arith.constant 0 : i32
    %18 = vector.broadcast %c0_i32 : i32 to vector<8x128xi32>
    %19 = arith.addi %17, %18 : vector<8x128xi32>
    %20 = vector.broadcast %0 : vector<8x1xi32> to vector<8x128xi32>
    %21 = arith.cmpi eq, %19, %20 : vector<8x128xi32>
    %cst_7 = arith.constant 0.000000e+00 : f32
    %22 = vector.broadcast %cst_7 : f32 to vector<8x128xf32>
    %23 = arith.select %21, %4, %22 : vector<8x128xi1>, vector<8x128xf32>
    %cst_8 = arith.constant dense<0.000000e+00> : vector<8xf32>
    %24 = vector.multi_reduction <add>, %23, %cst_8 [1] : vector<8x128xf32> to vector<8xf32>
    %25 = vector.shape_cast %24 : vector<8xf32> to vector<8x1xf32>
    %26 = arith.addf %3, %25 : vector<8x1xf32>
    %27 = math.log %16 : vector<8x1xf32>
    %28 = arith.addf %7, %27 : vector<8x1xf32>
    %29 = arith.subf %28, %26 : vector<8x1xf32>
    %c8_i32 = arith.constant 8 : i32
    %30 = arith.muli %arg0, %c8_i32 : i32
    %31 = tpu.iota {dimensions = array<i32: 0>} : vector<8x1xi32>
    %32 = vector.broadcast %30 : i32 to vector<8x1xi32>
    %33 = arith.addi %32, %31 : vector<8x1xi32>
    %c30_i32 = arith.constant 30 : i32
    %34 = vector.broadcast %c30_i32 : i32 to vector<8x1xi32>
    %35 = arith.cmpi slt, %33, %34 : vector<8x1xi32>
    %cst_9 = arith.constant 0.000000e+00 : f32
    %36 = vector.broadcast %cst_9 : f32 to vector<8x1xf32>
    %37 = arith.select %35, %29, %36 : vector<8x1xi1>, vector<8x1xf32>
    %c0_10 = arith.constant 0 : index
    %c0_11 = arith.constant 0 : index
    %38 = vector.load %arg3[%c0_10, %c0_11] : memref<8x1xf32, #tpu.memory_space<vmem>>, vector<8x1xf32>
    tpu.vector_store %arg3[%c0_10, %c0_11], %37 {strides = array<i32>} : memref<8x1xf32, #tpu.memory_space<vmem>>, vector<8x1xf32>,
    return
  }
  func.func @transform_0(%arg0: i32) -> (i32, i32) {
    %c0_i32 = arith.constant 0 : i32
    %c0_i32_0 = arith.constant 0 : i32
    return %arg0, %c0_i32 : i32, i32
  }
  func.func @transform_1(%arg0: i32) -> (i32, i32) {
    %c0_i32 = arith.constant 0 : i32
    %c0_i32_0 = arith.constant 0 : i32
    return %arg0, %c0_i32 : i32, i32
  }
  func.func @transform_2(%arg0: i32) -> (i32, i32) {
    %c0_i32 = arith.constant 0 : i32
    %c0_i32_0 = arith.constant 0 : i32
    return %arg0, %c0_i32 : i32, i32
  }
}

</mosaic_0001>

<bundles_post_ra>
// kernel: spl_loss_forward.1
= control target key start
LH: loop header
LB: loop body
LE: loop exit
PB: predicated region body
PF: predicated region fallthrough
CT: control target
= control target key end

     0   :  { %s309_s9 = smov 0   ;;  %s339_s0 = inlined_call_operand.vmem [shape: f32[30,128], index: 0, kind: input, shape index: {}]   ;;  %s340_s1 = inlined_call_operand.vmem [shape: s32[30,1], index: 1, kind: input, shape index: {}]   ;;  %s341_s2 = inlined_call_operand.vmem [shape: f32[30,1], index: 2, kind: output, shape index: {}]  }
   0x1 LB: > { %s315_s10 = sadd.s32 4294967295, %s291_s9   ;;  %p262_p0 = scmp.ge.s32.totalorder %s291_s9, 1  ;;  %s291_s9 = sphi %s309_s9, %s12_s9  }
   0x2   : > { %p120_p1 = scmp.lt.s32.totalorder %s291_s9, 5 }
   0x4   : > { %p121_p2 = pnand %p262_p0, %p120_p1 }
   0x5   : > { %p144_p3 = scmp.lt.s32.totalorder (!%p121_p2), %s315_s10, 3  ;;  %v293_v0 = vmov (!%p121_p2), 0   ;;  %v170_v6 = vlaneseq (!%p121_p2)  ;;  %s266_s19 = sshll.u32 (!%p121_p2), %s315_s10, 3  ;;  %vm191_vm2 = vcmask (!%p121_p2), 7168  }
   0x6   : > { %124 = sbr.rel (%p121_p2) target bundleno = 338 (0x152), region = 28  ;;  %278 = vset.pattern.permute.xlu0 (!%p121_p2), %v293_v0  ;;  %v187_v18 = vstv (!%p121_p2), %s266_s19 }
   0x7   : > { %v171_v7 = vand.u32 (!%p121_p2), 127, %v170_v6  ;;  %v186_v17 = vshrl.u32 (!%p121_p2), %v170_v6, 7 }
   0x9   : > { %v188_v20 = vadd.s32 (!%p121_p2), %v187_v18, %v186_v17 }
   0xb   : > { %vm189_vm1 = vcmp.lt.s32.totalorder (!%p121_p2), %v188_v20, 30 }
   0xd   : > { %s145_s11 = scalar_select %p144_p3, %s315_s10, 3 }
   0xf   : > { %s321_s12 = sshll.u32 %s145_s11, 3 }
  0x10   : > { %s147_s15 = scalar_lea.vmem %s339_s0, %s321_s12  ;;  %s151_s18 = scalar_lea.vmem %s340_s1, %s321_s12 }
  0x11   : > { %v157_v1 = vld [vmem:[%s147_s15] sm:$0xff]  ;;  %s155_s22 = scalar_lea.vmem %s341_s2, %s321_s12 }
  0x12   : > { %158 = vmax.xlane.f32.xlu0 %v157_v1  ;;  %v156_v2 = vld [vmem:[%s151_s18] sm:$0xff] }
  0x28   : > { %173 = vperm.xlu0 %278, %v156_v2  }
  0x9f   : > { %v159_v3 = vpop.xlane.xlu0 %158 }
  0xa0   : > { %v164_v4 = vsub.f32 %v157_v1, %v159_v3  ;;  %v160_v11 = vsub.f32 -inf, %v159_v3 }
  0xa2   : > { %v165_v5 = vmul.f32 1.442695, %v164_v4  ;;  %v161_v12 = vmul.f32 1.442695, %v160_v11 }
  0xa4   : > { %279 = vpow2.f32 %v165_v5 }
  0xa5   : > { %281 = vpow2.f32 %v161_v12 }
  0xa7   : > { %v174_v8 = vpop.permute.xlu0 %173 }
  0xa8   : > { %vm175_vm0 = vcmp.eq.s32.totalorder %v171_v7, %v174_v8 }
  0xa9   : > { %v176_v10 = vsel %vm175_vm0, %v157_v1, 0.0 }
  0xae   : > { %v280_v9 = vpop.eup %279 }
  0xaf   : > { %167 = vadd.xlane.f32.xlu1 %v280_v9  ;;  %v282_v13 = vpop.eup %281 }
  0xb0   : > { %v163_v14 = vmul.f32 0.0, %v282_v13 }
  0xb3   : > { %177 = vadd.xlane.f32.xlu1 %v176_v10 }
 0x13c   : > { %v168_v15 = vpop.xlane.xlu1 %167 }
 0x13d   : > { %v169_v16 = vadd.f32 %v168_v15, %v163_v14 }
 0x13f   : > { %283 = vlog2.f32 %v169_v16 }
 0x140   : > { %v178_v22 = vpop.xlane.xlu1 %177 }
 0x149   : > { %v284_v19 = vpop.eup %283 }
 0x14a   : > { %v181_v21 = vmul.f32 0.6931472, %v284_v19 }
 0x14c   : > { %v182_v23 = vadd.f32 %v181_v21, %v159_v3 }
 0x14e   : > { %v183_v24 = vsub.f32 %v182_v23, %v178_v22 }
 0x150   : > { %v190_v25 = vsel %vm189_vm1, %v183_v24, 0.0 }
 0x151   : > { %192 = vst.msk [vmem:[%s155_s22] sm:$0xff] %vm191_vm2, %v190_v25 }
 0x152 PF: > { %s12_s9 = sadd.s32 1, %s291_s9  }
 0x153   : > { %p9_p4 = scmp.ge.s32.totalorder %s12_s9, 6  }
 0x155   :  { %11 = sbr.rel (!%p9_p4) target bundleno = 1 (0x1), region = 61 }

</bundles_post_ra>
